<compile_context>
chip_gen: v5e
topology: v5e:2x2
jax: 0.10.0
libtpu: 0.0.40
codegen_flags: <defaults>
</compile_context>

<pallas_src>
import jax
import jax.numpy as jnp
from jax.experimental import pallas as pl
from jax.experimental.pallas import tpu as pltpu


def _round_up(x, m):
    return ((x + m - 1) // m) * m


def _gconv_gemm_kernel(x_ref, m_ref, b_ref, o_ref):
    # Single-K-block fast path: one MXU matmul, one bias add, one store.
    # x_ref: (tile_m, Kd)      rows = (batch, time), lanes = (node, in-chan)
    # m_ref: (Kd, tile_n)      fused graph x conv-weight operand
    # b_ref: (1, tile_n)       effective bias (f32)
    # o_ref: (tile_m, tile_n)  lane-dense output slab
    acc = jnp.dot(x_ref[...], m_ref[...], preferred_element_type=jnp.float32)
    o_ref[...] = (acc + b_ref[...]).astype(o_ref.dtype)


def _gconv_gemm_acc_kernel(x_ref, m_ref, b_ref, o_ref, acc_ref):
    # Reduction-tiled path for large V*Cin: f32 VMEM accumulator across the
    # "arbitrary" last grid axis; bias added and output stored once at the end.
    k = pl.program_id(2)

    @pl.when(k == 0)
    def _():
        acc_ref[...] = jnp.zeros_like(acc_ref)

    acc_ref[...] += jnp.dot(x_ref[...], m_ref[...],
                            preferred_element_type=jnp.float32)

    @pl.when(k == pl.num_programs(2) - 1)
    def _():
        o_ref[...] = (acc_ref[...] + b_ref[...]).astype(o_ref.dtype)


def graph_conv_nd(x, graph, weight, bias, graph_kernel_size, out_channels,
                  *, tile_m=256, tile_n=512, tile_k=512):
    """Forward of GraphConvND (N=2).  x: (n, Cin, V, T) NCHW.  graph: (K, V, W).

    Returns (out, out_graph) like the PyTorch module: out is
    (n, out_channels, W, T) and out_graph is None for a 3-D graph input.
    """
    if graph.ndim == 2:
        # TODO(synk): normalize_adjacency_matrix raises NotImplementedError in
        # the reference module; the 2-D graph path is therefore not supported.
        raise NotImplementedError("normalize_adjacency_matrix is not implemented")
    if graph.ndim != 3:
        raise ValueError("input[1].dim() should be 2 or 3.")

    n, cin, v, t = x.shape
    K = graph_kernel_size
    cout = out_channels
    k_a, v_a, w_a = graph.shape
    assert k_a == K and v_a == v

    compute_dtype = x.dtype  # follow caller dtype (f32 or bf16); no forced upcast

    # ---- wrapper-side precompute (tiny, done in f32) -----------------------
    # Fused operand: M[(v,c),(w,co)] = sum_k A[k,v,w] * W[k,co,c]
    w_r = weight.reshape(K, cout, cin).astype(jnp.float32)
    a_f = graph.astype(jnp.float32)
    m_full = jnp.einsum('kvw,koc->vcwo', a_f, w_r).reshape(v * cin, w_a * cout)
    # Effective bias: b_eff[w,co] = sum_k (sum_v A[k,v,w]) * bias[k,co]
    b_eff = jnp.einsum('kw,ko->wo', a_f.sum(axis=1),
                       bias.reshape(K, cout).astype(jnp.float32))
    b_eff = b_eff.reshape(1, w_a * cout)

    # x NCHW -> (n*T, V*Cin): (batch,time) on rows, (node, in-chan) on lanes.
    x2 = jnp.transpose(x, (0, 3, 2, 1)).reshape(n * t, v * cin).astype(compute_dtype)
    m_op = m_full.astype(compute_dtype)

    M = n * t                 # GEMM rows      (batch * time)
    N = w_a * cout            # GEMM cols      (out-node * out-chan), lane side
    Kd = v * cin              # GEMM contraction (node * in-chan)

    # Tile sizes: sublane-aligned rows (16 covers bf16 packing), lane-dense
    # (multiple-of-128) columns and contraction.
    tile_m = min(tile_m, _round_up(M, 16))
    tile_n = min(tile_n, _round_up(N, 128))
    tile_k = min(tile_k, _round_up(Kd, 128))
    M_pad = _round_up(M, tile_m)
    N_pad = _round_up(N, tile_n)
    K_pad = _round_up(Kd, tile_k)

    if M_pad != M or K_pad != Kd:
        x2 = jnp.pad(x2, ((0, M_pad - M), (0, K_pad - Kd)))
    if N_pad != N or K_pad != Kd:
        m_op = jnp.pad(m_op, ((0, K_pad - Kd), (0, N_pad - N)))
    if N_pad != N:
        b_eff = jnp.pad(b_eff, ((0, 0), (0, N_pad - N)))

    kt = K_pad // tile_k

    if kt == 1:
        grid = (M_pad // tile_m, N_pad // tile_n)
        kernel = _gconv_gemm_kernel
        in_specs = [
            pl.BlockSpec((tile_m, tile_k), lambda i, j: (i, 0)),
            pl.BlockSpec((tile_k, tile_n), lambda i, j: (0, j)),
            pl.BlockSpec((1, tile_n), lambda i, j: (0, j)),
        ]
        out_specs = pl.BlockSpec((tile_m, tile_n), lambda i, j: (i, j))
        scratch_shapes = []
        dim_sem = ("parallel", "parallel")
    else:
        grid = (M_pad // tile_m, N_pad // tile_n, kt)
        kernel = _gconv_gemm_acc_kernel
        in_specs = [
            pl.BlockSpec((tile_m, tile_k), lambda i, j, k: (i, k)),
            pl.BlockSpec((tile_k, tile_n), lambda i, j, k: (k, j)),
            pl.BlockSpec((1, tile_n), lambda i, j, k: (0, j)),
        ]
        out_specs = pl.BlockSpec((tile_m, tile_n), lambda i, j, k: (i, j))
        scratch_shapes = [pltpu.VMEM((tile_m, tile_n), jnp.float32)]
        dim_sem = ("parallel", "parallel", "arbitrary")

    out_flat = pl.pallas_call(
        kernel,
        out_shape=jax.ShapeDtypeStruct((M_pad, N_pad), compute_dtype),
        grid_spec=pltpu.PrefetchScalarGridSpec(
            num_scalar_prefetch=0,
            grid=grid,
            in_specs=in_specs,
            out_specs=out_specs,
            scratch_shapes=scratch_shapes,
        ),
        compiler_params=pltpu.CompilerParams(dimension_semantics=dim_sem),
    )(x2, m_op, b_eff)

    # (n*T, W*Cout) -> NCHW (n, Cout, W, T), matching torch output .contiguous()
    out_flat = out_flat[:M, :N]
    out = out_flat.reshape(n, t, w_a, cout).transpose(0, 3, 2, 1)
    return out, None


def reference(x, graph, weight, bias, graph_kernel_size, out_channels):
    """Pure-JAX reference matching the PyTorch forward exactly (f32)."""
    n, cin, v, t = x.shape
    K, cout = graph_kernel_size, out_channels
    w2 = weight.reshape(K * cout, cin)
    y = jnp.einsum('ncvt,oc->novt', x, w2) + bias[None, :, None, None]
    y = y.reshape(n, K, cout, v, t)
    return jnp.einsum('nkcvx,kvw->ncwx', y, graph)


if __name__ == "__main__":
    n, cin, cout, K, V, T = 2, 4, 8, 3, 16, 16

    key = jax.random.PRNGKey(0)
    k1, k2, k3, k4 = jax.random.split(key, 4)
    x = jax.random.normal(k1, (n, cin, V, T), jnp.float32)              # NCHW input
    graph = jax.random.normal(k2, (K, V, V), jnp.float32)               # 3-D graph (A)
    # Conv2d(cin, K*cout, kernel_size=(1,1)) parameters (squeezed to 2-D)
    weight = 0.1 * jax.random.normal(k3, (K * cout, cin), jnp.float32)
    bias = 0.1 * jax.random.normal(k4, (K * cout,), jnp.float32)

    ref = reference(x, graph, weight, bias, K, cout)

    # ---- f32 path: strict check -------------------------------------------
    out, out_graph = graph_conv_nd(x, graph, weight, bias, K, cout)
    out = jax.block_until_ready(out)
    assert out.shape == (n, cout, V, T), out.shape
    assert out_graph is None
    assert jnp.allclose(out, ref, atol=1e-4, rtol=1e-4), \
        float(jnp.max(jnp.abs(out - ref)))

    # ---- bf16 path: bf16 MXU operands, f32 accumulation (loose check) ------
    out_bf, _ = graph_conv_nd(x.astype(jnp.bfloat16), graph, weight, bias, K, cout)
    out_bf = jax.block_until_ready(out_bf)
    assert out_bf.dtype == jnp.bfloat16
    assert jnp.allclose(out_bf.astype(jnp.float32), ref, atol=3e-1, rtol=5e-2), \
        float(jnp.max(jnp.abs(out_bf.astype(jnp.float32) - ref)))

    print("KERNEL_OK")
</pallas_src>

<mosaic_0001>
module attributes {stable_mosaic.version = 11 : i64} {
  func.func @_gconv_gemm_kernel(%arg0: i32, %arg1: i32, %arg2: memref<32x128xf32, #tpu.memory_space<vmem>>, %arg3: memref<128x128xf32, #tpu.memory_space<vmem>>, %arg4: memref<1x128xf32, #tpu.memory_space<vmem>>, %arg5: memref<32x128xf32, #tpu.memory_space<vmem>>) attributes {dimension_semantics = [#tpu.dimension_semantics<parallel>, #tpu.dimension_semantics<parallel>], iteration_bounds = array<i64: 1, 1>, scalar_prefetch = 0 : i64, scratch_operands = 0 : i64, tpu.core_type = #tpu.core_type<tc>, window_params = [{transform_indices = @transform_0, window_bounds = array<i64: 32, 128>}, {transform_indices = @transform_1, window_bounds = array<i64: 128, 128>}, {transform_indices = @transform_2, window_bounds = array<i64: 1, 128>}, {transform_indices = @transform_3, window_bounds = array<i64: 32, 128>}]} {
    %c0 = arith.constant 0 : index
    %c0_0 = arith.constant 0 : index
    %0 = vector.load %arg2[%c0, %c0_0] : memref<32x128xf32, #tpu.memory_space<vmem>>, vector<32x128xf32>
    %c0_1 = arith.constant 0 : index
    %c0_2 = arith.constant 0 : index
    %1 = vector.load %arg3[%c0_1, %c0_2] : memref<128x128xf32, #tpu.memory_space<vmem>>, vector<128x128xf32>
    %cst = arith.constant dense<0.000000e+00> : vector<32x128xf32>
    %2 = tpu.matmul %0, %1, %cst {dimension_numbers = #tpu.dot_dimension_numbers<[1], [0], [0], [1], [0, 0, 1, 1], [], []>} : vector<32x128xf32>, vector<128x128xf32>, vector<32x128xf32> -> vector<32x128xf32>
    %c0_3 = arith.constant 0 : index
    %c0_4 = arith.constant 0 : index
    %3 = vector.load %arg4[%c0_3, %c0_4] : memref<1x128xf32, #tpu.memory_space<vmem>>, vector<1x128xf32>
    %4 = vector.broadcast %3 : vector<1x128xf32> to vector<32x128xf32>
    %5 = arith.addf %2, %4 : vector<32x128xf32>
    %c0_5 = arith.constant 0 : index
    %c0_6 = arith.constant 0 : index
    %6 = vector.load %arg5[%c0_5, %c0_6] : memref<32x128xf32, #tpu.memory_space<vmem>>, vector<32x128xf32>
    tpu.vector_store %arg5[%c0_5, %c0_6], %5 {strides = array<i32>} : memref<32x128xf32, #tpu.memory_space<vmem>>, vector<32x128xf32>,
    return
  }
  func.func @transform_0(%arg0: i32, %arg1: i32) -> (i32, i32) {
    %c0_i32 = arith.constant 0 : i32
    %c0_i32_0 = arith.constant 0 : i32
    return %arg0, %c0_i32 : i32, i32
  }
  func.func @transform_1(%arg0: i32, %arg1: i32) -> (i32, i32) {
    %c0_i32 = arith.constant 0 : i32
    %c0_i32_0 = arith.constant 0 : i32
    return %c0_i32, %arg1 : i32, i32
  }
  func.func @transform_2(%arg0: i32, %arg1: i32) -> (i32, i32) {
    %c0_i32 = arith.constant 0 : i32
    %c0_i32_0 = arith.constant 0 : i32
    return %c0_i32, %arg1 : i32, i32
  }
  func.func @transform_3(%arg0: i32, %arg1: i32) -> (i32, i32) {
    %c0_i32 = arith.constant 0 : i32
    return %arg0, %arg1 : i32, i32
  }
}

</mosaic_0001>

<bundles_post_ra>
// kernel: tpu_custom_call.1
= control target key start
LH: loop header
LB: loop body
LE: loop exit
PB: predicated region body
PF: predicated region fallthrough
CT: control target
= control target key end

     0   :  { %8 = vsyncpa [#allocation3], 0  ;;  %s302_s0 = inlined_call_operand.hbm [shape: f32[32,128], index: 0, kind: input, shape index: {}]   ;;  %s303_s1 = inlined_call_operand.hbm [shape: f32[128,128], index: 1, kind: input, shape index: {}]   ;;  %s304_s2 = inlined_call_operand.vmem [shape: f32[1,128], index: 2, kind: input, shape index: {}]   ;;  %s305_s3 = inlined_call_operand.hbm [shape: f32[32,128], index: 3, kind: output, shape index: {}]  }
   0x1   :  { %9 = vsyncpa [#allocation6], 0 }
   0x2   :  { %10 = vsyncpa [#allocation4], 0  ;;  %s15_s14 = sshll.u32 %s302_s0, 4  ;;  %s256_s15 = smov [#allocation2]   ;;  %s16_s14 = int_to_ptr.hbm [resolvable:$true] %s15_s14 }
   0x3   :  { %s17_s16 = sshll.u32 %s256_s15, 4  ;;  %s28_s19 = sshll.u32 %s303_s1, 4  ;;  %s18_s16 = int_to_ptr.vmem [resolvable:$true] %s17_s16  ;;  %s29_s19 = int_to_ptr.hbm [resolvable:$true] %s28_s19 }
   0x4   :  { %s257_s20 = smov 128   ;;  %s258_s21 = smov 8  }
   0x5   :  { %23 = dma.hbm_to_vmem [thread:$0]  %s16_s14, 512, %s18_s16, [#allocation3], %s257_s20, %s257_s20, %s258_s21  }
   0x6   :  { %s259_s22 = smov [#allocation5]  }
   0x7   :  { %s30_s23 = sshll.u32 %s259_s22, 4  ;;  %s31_s23 = int_to_ptr.vmem [resolvable:$true] %s30_s23 }
   0x8   :  { %36 = dma.hbm_to_vmem [thread:$0]  %s29_s19, 2048, %s31_s23, [#allocation6], %s257_s20, %s257_s20, %s258_s21  }
   0x9   :  { %250 = dma.done.wait [#allocation3], 512  }
   0xa   :  { %251 = vsyncadd [#allocation3], 4294966784 }
   0xb   :  { %252 = dma.done.wait [#allocation6], 2048  }
   0xc   :  { %253 = vsyncadd [#allocation6], 4294965248  ;;  %v66_v0 = vld [vmem:[#allocation5 + $0x78] sm:$0xff]  ;;  %v65_v1 = vld [vmem:[#allocation5 + $0x70] sm:$0xff]  ;;  %s260_s24 = smov [#allocation7]   ;;  %s110_s28 = sshll.u32 %s305_s3, 4  ;;  %s111_s28 = int_to_ptr.hbm [resolvable:$true] %s110_s28 }
   0xd   :  { %125 = vmatpush.msra.mxu2 %v66_v0  ;;  %126 = vmatpush.msra.mxu3 %v66_v0  ;;  %v64_v2 = vld [vmem:[#allocation5 + $0x68] sm:$0xff]  ;;  %v63_v3 = vld [vmem:[#allocation5 + $0x60] sm:$0xff]  ;;  %v62_v4 = vld [vmem:[#allocation5 + $0x58] sm:$0xff]  ;;  %s108_s25 = sshll.u32 %s260_s24, 4  ;;  %s109_s25 = int_to_ptr.vmem [resolvable:$true] %s108_s25 }
   0xe   :  { %71 = vmatpush.msra.mxu0 %v66_v0  ;;  %124 = vmatpush.msra.mxu1 %v66_v0  ;;  %v61_v5 = vld [vmem:[#allocation5 + $0x50] sm:$0xff]  ;;  %v60_v6 = vld [vmem:[#allocation5 + $0x48] sm:$0xff]  ;;  %v59_v7 = vld [vmem:[#allocation5 + $0x40] sm:$0xff] }
   0xf   :  { %128 = vmatpush.msra.mxu2 %v65_v1  ;;  %129 = vmatpush.msra.mxu3 %v65_v1  ;;  %v58_v8 = vld [vmem:[#allocation5 + $0x38] sm:$0xff]  ;;  %v57_v9 = vld [vmem:[#allocation5 + $0x30] sm:$0xff]  ;;  %v56_v10 = vld [vmem:[#allocation5 + $0x28] sm:$0xff] }
  0x10   :  { %72 = vmatpush.msra.mxu0 %v65_v1  ;;  %127 = vmatpush.msra.mxu1 %v65_v1  ;;  %v55_v11 = vld [vmem:[#allocation5 + $0x20] sm:$0xff]  ;;  %v54_v12 = vld [vmem:[#allocation5 + $0x18] sm:$0xff]  ;;  %v53_v13 = vld [vmem:[#allocation5 + $0x10] sm:$0xff] }
  0x11   :  { %131 = vmatpush.msra.mxu2 %v64_v2  ;;  %132 = vmatpush.msra.mxu3 %v64_v2  ;;  %v52_v14 = vld [vmem:[#allocation5 + $0x8] sm:$0xff]  ;;  %v51_v15 = vld [vmem:[#allocation5] sm:$0xff]  ;;  %v49_v16 = vld [vmem:[#allocation2 + $0x10] sm:$0xff] }
  0x12   :  { %73 = vmatpush.msra.mxu0 %v64_v2  ;;  %130 = vmatpush.msra.mxu1 %v64_v2  ;;  %v50_v17 = vld [vmem:[#allocation2 + $0x18] sm:$0xff]  ;;  %v47_v18 = vld [vmem:[#allocation2] sm:$0xff]  ;;  %v48_v19 = vld [vmem:[#allocation2 + $0x8] sm:$0xff] }
  0x13   :  { %134 = vmatpush.msra.mxu2 %v63_v3  ;;  %135 = vmatpush.msra.mxu3 %v63_v3  ;;  %v177_v20 = vld [vmem:[%s304_s2] ss:$0 sm:$0xff] }
  0x14   :  { %74 = vmatpush.msra.mxu0 %v63_v3  ;;  %133 = vmatpush.msra.mxu1 %v63_v3 }
  0x15   :  { %137 = vmatpush.msra.mxu2 %v62_v4  ;;  %138 = vmatpush.msra.mxu3 %v62_v4 }
  0x16   :  { %75 = vmatpush.msra.mxu0 %v62_v4  ;;  %136 = vmatpush.msra.mxu1 %v62_v4 }
  0x17   :  { %140 = vmatpush.msra.mxu2 %v61_v5  ;;  %141 = vmatpush.msra.mxu3 %v61_v5 }
  0x18   :  { %76 = vmatpush.msra.mxu0 %v61_v5  ;;  %139 = vmatpush.msra.mxu1 %v61_v5 }
  0x19   :  { %143 = vmatpush.msra.mxu2 %v60_v6  ;;  %144 = vmatpush.msra.mxu3 %v60_v6 }
  0x1a   :  { %77 = vmatpush.msra.mxu0 %v60_v6  ;;  %142 = vmatpush.msra.mxu1 %v60_v6 }
  0x1b   :  { %146 = vmatpush.msra.mxu2 %v59_v7  ;;  %147 = vmatpush.msra.mxu3 %v59_v7 }
  0x1c   :  { %78 = vmatpush.msra.mxu0 %v59_v7  ;;  %145 = vmatpush.msra.mxu1 %v59_v7 }
  0x1d   :  { %149 = vmatpush.msra.mxu2 %v58_v8  ;;  %150 = vmatpush.msra.mxu3 %v58_v8 }
  0x1e   :  { %79 = vmatpush.msra.mxu0 %v58_v8  ;;  %148 = vmatpush.msra.mxu1 %v58_v8 }
  0x1f   :  { %152 = vmatpush.msra.mxu2 %v57_v9  ;;  %153 = vmatpush.msra.mxu3 %v57_v9 }
  0x20   :  { %80 = vmatpush.msra.mxu0 %v57_v9  ;;  %151 = vmatpush.msra.mxu1 %v57_v9 }
  0x21   :  { %155 = vmatpush.msra.mxu2 %v56_v10  ;;  %156 = vmatpush.msra.mxu3 %v56_v10 }
  0x22   :  { %81 = vmatpush.msra.mxu0 %v56_v10  ;;  %154 = vmatpush.msra.mxu1 %v56_v10 }
  0x23   :  { %158 = vmatpush.msra.mxu2 %v55_v11  ;;  %159 = vmatpush.msra.mxu3 %v55_v11 }
  0x24   :  { %82 = vmatpush.msra.mxu0 %v55_v11  ;;  %157 = vmatpush.msra.mxu1 %v55_v11 }
  0x25   :  { %161 = vmatpush.msra.mxu2 %v54_v12  ;;  %162 = vmatpush.msra.mxu3 %v54_v12 }
  0x26   :  { %83 = vmatpush.msra.mxu0 %v54_v12  ;;  %160 = vmatpush.msra.mxu1 %v54_v12 }
  0x27   :  { %164 = vmatpush.msra.mxu2 %v53_v13  ;;  %165 = vmatpush.msra.mxu3 %v53_v13 }
  0x28   :  { %84 = vmatpush.msra.mxu0 %v53_v13  ;;  %163 = vmatpush.msra.mxu1 %v53_v13 }
  0x29   :  { %167 = vmatpush.msra.mxu2 %v52_v14  ;;  %168 = vmatpush.msra.mxu3 %v52_v14 }
  0x2a   :  { %85 = vmatpush.msra.mxu0 %v52_v14  ;;  %166 = vmatpush.msra.mxu1 %v52_v14 }
  0x2b   :  { %170 = vmatpush.msra.mxu2 %v51_v15  ;;  %171 = vmatpush.msra.mxu3 %v51_v15 }
  0x2c   :  { %93 = vmatmul.f32.vlgmr.msra.gmra.mxu2 %v49_v16  ;;  %96 = vmatmul.f32.vlgmr.msra.gmra.mxu3 %v50_v17 }
  0x2d   :  { %86 = vmatpush.msra.mxu0 %v51_v15  ;;  %169 = vmatpush.msra.mxu1 %v51_v15 }
  0x2e   :  { %87 = vmatmul.f32.vlgmr.msra.gmra.mxu0 %v47_v18  ;;  %90 = vmatmul.f32.vlgmr.msra.gmra.mxu1 %v48_v19 }
  0xab   :  { %v88_v21 = vpop.f32.mrf.mxu0  ;;  %v91_v22 = vpop.f32.mrf.mxu1 }
  0xac   :  { %v89_v23 = vadd.f32 %v177_v20, %v88_v21  ;;  %v92_v24 = vadd.f32 %v177_v20, %v91_v22 }
  0xae   :  { %100 = vst [vmem:[#allocation7] sm:$0xff] %v89_v23 }
  0xaf   :  { %101 = vst [vmem:[#allocation7 + $0x8] sm:$0xff] %v92_v24  ;;  %v94_v25 = vpop.f32.mrf.mxu2  ;;  %v97_v26 = vpop.f32.mrf.mxu3 }
  0xb0   :  { %v95_v27 = vadd.f32 %v177_v20, %v94_v25  ;;  %v98_v28 = vadd.f32 %v177_v20, %v97_v26 }
  0xb2   :  { %102 = vst [vmem:[#allocation7 + $0x10] sm:$0xff] %v95_v27 }
  0xb3   :  { %103 = vst [vmem:[#allocation7 + $0x18] sm:$0xff] %v98_v28 }
  0xb4   :  { %116 = dma.vmem_to_hbm [thread:$0]  %s109_s25, 512, %s111_s28, [#allocation4], %s257_s20, %s257_s20, %s258_s21  }
  0xb5   :  { %254 = dma.done.wait [#allocation4], 512  }
  0xb6   :  { %255 = vsyncadd [#allocation4], 4294966784 }
  0xb7   :  { %121 = vsyncpa [#allocation3], 1 }
  0xb8   :  { %122 = vsyncpa [#allocation6], 1 }
  0xb9   :  { %123 = vsyncpa [#allocation4], 1 }

</bundles_post_ra>
